<compile_context>
chip_gen: v7x
topology: tpu7x:2x2x1
jax: 0.10.0
libtpu: 0.0.40
codegen_flags: <defaults>
</compile_context>

<pallas_src>
import math

import jax
import jax.numpy as jnp
from jax.experimental import pallas as pl
from jax.experimental.pallas import tpu as pltpu


_NEG_LARGE = -1e30          # finite "-inf": padded classes get exactly 0 probability
_VMEM_BUDGET = 12 * 1024 * 1024   # conservative: fits v5e's 16 MiB scoped default


def _round_up(v, m):
    return ((v + m - 1) // m) * m


def _pick_row_tile(m_padded, emb, n_out, in_bytes, out_bytes, *, max_tile=1024):
    """Largest multiple-of-8 row tile fitting the conservative VMEM budget.

    Accounts for double-buffered x and output tiles plus the resident
    (single-buffered) weight and bias.  12 MiB keeps us under v5e's 16 MiB
    scoped-VMEM default; v6e (32 MiB scoped) and v7x (32 MiB scoped / 64 MiB
    physical) have strictly more headroom, so the same cap is safe everywhere.
    """
    resident = emb * n_out * in_bytes + n_out * 4          # weight + f32 bias
    per_row = 2 * emb * in_bytes + 2 * n_out * out_bytes   # 2x x-tile + 2x out-tile
    fit = max(8, ((_VMEM_BUDGET - resident) // max(per_row, 1)) // 8 * 8)
    tm = min(fit, max_tile, m_padded)
    # v7x megacore: "parallel" sharding only helps with >= 2 grid steps.
    if m_padded >= 16:
        tm = min(tm, _round_up(pl.cdiv(m_padded, 2), 8))
    return max(8, (tm // 8) * 8)


def _resident_spec(block_shape, index_map):
    """BlockSpec for a grid-invariant operand, single-buffered when supported."""
    try:
        return pl.BlockSpec(block_shape, index_map, pipeline_mode=pl.Buffered(1))
    except (AttributeError, TypeError):   # older jax: fall back to default buffering
        return pl.BlockSpec(block_shape, index_map)


def _cls_head_kernel(x_ref, w_ref, b_ref, o_ref):
    # x_ref: (TM, E)      row tile of flattened inputs (compute dtype)
    # w_ref: (E,  N_out)  resident weight (transposed, optionally lane-padded)
    # b_ref: (1,  N_out)  resident f32 bias (padded columns hold -1e30)
    # o_ref: (TM, N_out)  softmax probabilities
    logits = jnp.dot(x_ref[...], w_ref[...], preferred_element_type=jnp.float32)
    logits = logits + b_ref[...]
    m = jnp.max(logits, axis=-1, keepdims=True)
    e = jnp.exp(logits - m)                    # EUP; padded lanes -> exp(-huge) == 0
    s = jnp.sum(e, axis=-1, keepdims=True)
    # Approx reciprocal runs on the EUP slot; one Newton step restores full
    # f32 accuracy without paying for a VALU divide.
    inv = pl.reciprocal(s, approx=True)
    inv = inv * (2.0 - s * inv)
    o_ref[...] = (e * inv).astype(o_ref.dtype)


def prepare_classification_head(weight, bias, *, compute_dtype=jnp.float32):
    """Pre-pack the nn.Linear parameters ONCE (hoisted out of the forward path).

    weight: [n_class, emb_size], bias: [n_class].
    compute_dtype=jnp.bfloat16 halves x/weight HBM traffic and matches the
    native MXU input dtype on v5e/v6e/v7x (accumulation and softmax stay f32),
    at the cost of ~1e-3-level probability error.
    """
    n_class, emb = weight.shape
    np_lanes = _round_up(n_class, 128)
    # Lane-pad the class dim only when the waste is small (<= 25%).  For tiny
    # heads (n_class=10) padding to 128 would inflate output HBM writes ~13x
    # and force an extra slice; the masked stores avoided by padding hide
    # under DMA in this memory-bound kernel anyway.
    use_padded = (np_lanes - n_class) * 4 <= n_class
    n_out = np_lanes if use_padded else n_class

    w_mat = jnp.zeros((emb, n_out), compute_dtype).at[:, :n_class].set(
        weight.T.astype(compute_dtype))
    if use_padded:
        # Invariant: real logits must stay > -1e30 and the bias dtype must
        # have an f32-range exponent (true here: bias kept in f32), so a
        # padded lane can never win the row max.
        b_row = jnp.full((1, n_out), _NEG_LARGE, jnp.float32)
        b_row = b_row.at[0, :n_class].set(bias.astype(jnp.float32))
    else:
        b_row = bias.astype(jnp.float32).reshape(1, n_class)

    return {
        "w_mat": w_mat,
        "b_row": b_row,
        "emb": emb,
        "n_class": n_class,
        "n_out": n_out,
        "compute_dtype": compute_dtype,
    }


def classification_head_apply(params, x, *, max_row_tile=1024):
    """softmax(x @ W.T + b, axis=-1) using pre-packed params.  x: [..., emb_size]."""
    *lead, emb = x.shape
    if emb != params["emb"]:
        raise ValueError(f"expected last dim {params['emb']}, got {emb}")
    n_class = params["n_class"]
    n_out = params["n_out"]
    compute_dtype = params["compute_dtype"]
    out_dtype = x.dtype

    # Collapse all leading dims into the matmul M dimension.
    m = math.prod(lead) if lead else 1
    x2 = x.reshape(m, emb).astype(compute_dtype)

    # Sublane-align the row count (multiple of 8) so loads/stores are unmasked.
    m_pad = _round_up(m, 8)
    if m_pad != m:
        x2 = jnp.pad(x2, ((0, m_pad - m), (0, 0)))

    in_bytes = jnp.dtype(compute_dtype).itemsize
    out_bytes = jnp.dtype(out_dtype).itemsize
    tm = _pick_row_tile(m_pad, emb, n_out, in_bytes, out_bytes, max_tile=max_row_tile)
    grid = (pl.cdiv(m_pad, tm),)
    # Note: if m_pad % tm != 0 the last block's out-of-range rows are computed
    # on whatever data the tile holds; the result is row-local and its
    # writeback is masked, so valid rows are unaffected.

    out = pl.pallas_call(
        _cls_head_kernel,
        out_shape=jax.ShapeDtypeStruct((m_pad, n_out), out_dtype),
        grid_spec=pltpu.PrefetchScalarGridSpec(
            num_scalar_prefetch=0,
            grid=grid,
            in_specs=[
                pl.BlockSpec((tm, emb), lambda i: (i, 0)),        # row tile of x
                _resident_spec((emb, n_out), lambda i: (0, 0)),   # resident weight
                _resident_spec((1, n_out), lambda i: (0, 0)),     # resident bias
            ],
            out_specs=pl.BlockSpec((tm, n_out), lambda i: (i, 0)),
        ),
        compiler_params=pltpu.CompilerParams(
            dimension_semantics=("parallel",)),
    )(x2, params["w_mat"], params["b_row"])

    # Drop row / class padding (no-op slices when nothing was padded).
    out = out[:m, :n_class]
    return out.reshape(*lead, n_class)


def classification_head_forward(x, weight, bias, *, compute_dtype=jnp.float32):
    """One-shot convenience wrapper (prefer prepare+apply to hoist packing)."""
    params = prepare_classification_head(weight, bias, compute_dtype=compute_dtype)
    return classification_head_apply(params, x)


def _reference_forward(x, weight, bias):
    return jax.nn.softmax(x @ weight.T + bias, axis=-1)


if __name__ == "__main__":
    # Module defaults: emb_size=16, n_class=10.  x is the pooled ViT feature.
    emb_size, n_class, batch = 16, 10, 2

    key = jax.random.PRNGKey(0)
    k1, k2, k3, k4 = jax.random.split(key, 4)

    x = jax.random.normal(k1, (batch, emb_size), jnp.float32)
    weight = jax.random.normal(k2, (n_class, emb_size), jnp.float32) * 0.1
    bias = jax.random.normal(k3, (n_class,), jnp.float32) * 0.1

    # Pack the linear params once (hoisted), then apply.
    params = prepare_classification_head(weight, bias)

    out = jax.block_until_ready(classification_head_apply(params, x))
    ref = jax.block_until_ready(_reference_forward(x, weight, bias))
    assert out.shape == (batch, n_class), out.shape
    assert jnp.allclose(out, ref, atol=1e-5, rtol=1e-5), "mismatch vs reference"
    assert jnp.allclose(jnp.sum(out, axis=-1), 1.0, atol=1e-5), "rows not normalized"

    # Second shape: extra leading dims, M=200 rows (not a multiple of the tile)
    # -> multi-step "parallel" grid, row padding, ragged last block writeback.
    x_big = jax.random.normal(k4, (25, 8, emb_size), jnp.float32)
    out_big = jax.block_until_ready(classification_head_apply(params, x_big))
    ref_big = jax.block_until_ready(_reference_forward(x_big, weight, bias))
    assert out_big.shape == (25, 8, n_class), out_big.shape
    assert jnp.allclose(out_big, ref_big, atol=1e-5, rtol=1e-5), "mismatch (big batch)"

    print("KERNEL_OK")
</pallas_src>

<mosaic_0001>
module attributes {stable_mosaic.version = 11 : i64} {
  func.func @_cls_head_kernel(%arg0: i32, %arg1: memref<8x16xf32, #tpu.memory_space<vmem>>, %arg2: memref<16x10xf32, #tpu.memory_space<vmem>>, %arg3: memref<1x10xf32, #tpu.memory_space<vmem>>, %arg4: memref<8x10xf32, #tpu.memory_space<vmem>>) attributes {dimension_semantics = [#tpu.dimension_semantics<parallel>], iteration_bounds = array<i64: 1>, scalar_prefetch = 0 : i64, scratch_operands = 0 : i64, tpu.core_type = #tpu.core_type<tc>, window_params = [{transform_indices = @transform_0, window_bounds = array<i64: 8, 16>}, {pipeline_mode = #tpu.pipeline_mode<synchronous>, transform_indices = @transform_1, window_bounds = array<i64: 16, 10>}, {pipeline_mode = #tpu.pipeline_mode<synchronous>, transform_indices = @transform_2, window_bounds = array<i64: 1, 10>}, {transform_indices = @transform_3, window_bounds = array<i64: 8, 10>}]} {
    %c0 = arith.constant 0 : index
    %c0_0 = arith.constant 0 : index
    %0 = vector.load %arg1[%c0, %c0_0] : memref<8x16xf32, #tpu.memory_space<vmem>>, vector<8x16xf32>
    %c0_1 = arith.constant 0 : index
    %c0_2 = arith.constant 0 : index
    %1 = vector.load %arg2[%c0_1, %c0_2] : memref<16x10xf32, #tpu.memory_space<vmem>>, vector<16x10xf32>
    %cst = arith.constant dense<0.000000e+00> : vector<8x10xf32>
    %2 = tpu.matmul %0, %1, %cst {dimension_numbers = #tpu.dot_dimension_numbers<[1], [0], [0], [1], [0, 0, 1, 1], [], []>} : vector<8x16xf32>, vector<16x10xf32>, vector<8x10xf32> -> vector<8x10xf32>
    %c0_3 = arith.constant 0 : index
    %c0_4 = arith.constant 0 : index
    %3 = vector.load %arg3[%c0_3, %c0_4] : memref<1x10xf32, #tpu.memory_space<vmem>>, vector<1x10xf32>
    %4 = vector.broadcast %3 : vector<1x10xf32> to vector<8x10xf32>
    %5 = arith.addf %2, %4 : vector<8x10xf32>
    %cst_5 = arith.constant dense<0xFF800000> : vector<8xf32>
    %6 = vector.multi_reduction <maximumf>, %5, %cst_5 [1] : vector<8x10xf32> to vector<8xf32>
    %7 = vector.shape_cast %6 : vector<8xf32> to vector<8x1xf32>
    %8 = vector.broadcast %7 : vector<8x1xf32> to vector<8x10xf32>
    %9 = arith.subf %5, %8 : vector<8x10xf32>
    %10 = math.exp %9 : vector<8x10xf32>
    %cst_6 = arith.constant dense<0.000000e+00> : vector<8xf32>
    %11 = vector.multi_reduction <add>, %10, %cst_6 [1] : vector<8x10xf32> to vector<8xf32>
    %12 = vector.shape_cast %11 : vector<8xf32> to vector<8x1xf32>
    %13 = tpu.reciprocal %12 {approx = true} : vector<8x1xf32> -> vector<8x1xf32>
    %14 = arith.mulf %12, %13 : vector<8x1xf32>
    %cst_7 = arith.constant 2.000000e+00 : f32
    %15 = vector.broadcast %cst_7 : f32 to vector<8x1xf32>
    %16 = arith.subf %15, %14 : vector<8x1xf32>
    %17 = arith.mulf %13, %16 : vector<8x1xf32>
    %18 = vector.broadcast %17 : vector<8x1xf32> to vector<8x10xf32>
    %19 = arith.mulf %10, %18 : vector<8x10xf32>
    %c0_8 = arith.constant 0 : index
    %c0_9 = arith.constant 0 : index
    %20 = vector.load %arg4[%c0_8, %c0_9] : memref<8x10xf32, #tpu.memory_space<vmem>>, vector<8x10xf32>
    tpu.vector_store %arg4[%c0_8, %c0_9], %19 {strides = array<i32>} : memref<8x10xf32, #tpu.memory_space<vmem>>, vector<8x10xf32>,
    return
  }
  func.func @transform_0(%arg0: i32) -> (i32, i32) {
    %c0_i32 = arith.constant 0 : i32
    %c0_i32_0 = arith.constant 0 : i32
    return %arg0, %c0_i32 : i32, i32
  }
  func.func @transform_1(%arg0: i32) -> (i32, i32) {
    %c0_i32 = arith.constant 0 : i32
    %c0_i32_0 = arith.constant 0 : i32
    %c0_i32_1 = arith.constant 0 : i32
    return %c0_i32, %c0_i32_0 : i32, i32
  }
  func.func @transform_2(%arg0: i32) -> (i32, i32) {
    %c0_i32 = arith.constant 0 : i32
    %c0_i32_0 = arith.constant 0 : i32
    %c0_i32_1 = arith.constant 0 : i32
    return %c0_i32, %c0_i32_0 : i32, i32
  }
  func.func @transform_3(%arg0: i32) -> (i32, i32) {
    %c0_i32 = arith.constant 0 : i32
    %c0_i32_0 = arith.constant 0 : i32
    return %arg0, %c0_i32 : i32, i32
  }
}

</mosaic_0001>

<bundles_post_ra>
// kernel: tpu_custom_call.1
= control target key start
LH: loop header
LB: loop body
LE: loop exit
PB: predicated region body
PF: predicated region fallthrough
CT: control target
= control target key end

     0   :  { %8 = vsyncpa [#allocation3], 0  ;;  %s333_s0 = inlined_call_operand.hbm [shape: f32[8,16], index: 0, kind: input, shape index: {}]   ;;  %s334_s1 = inlined_call_operand.hbm [shape: f32[16,10], index: 1, kind: input, shape index: {}]   ;;  %s335_s2 = inlined_call_operand.vmem [shape: f32[1,10], index: 2, kind: input, shape index: {}]   ;;  %s336_s3 = inlined_call_operand.hbm [shape: f32[8,10], index: 3, kind: output, shape index: {}]  }
   0x1   :  { %9 = vsyncpa [#allocation6], 0 }
   0x2   :  { %10 = vsyncpa [#allocation4], 0  ;;  %s256_s12 = smov [#allocation2]   ;;  %s257_s14 = smov [#allocation5]  }
   0x3   :  { %s17_s13 = sshll.u32 %s256_s12, 4  ;;  %s26_s15 = sshll.u32 %s257_s14, 4  ;;  %s18_s13 = int_to_ptr.vmem [resolvable:$true] %s17_s13  ;;  %s284_s15 = int_to_ptr.vmem [resolvable:$true] %s26_s15 }
   0x4   :  { %s184_s18 = scalar_lea.hbm %s333_s0, 128 }
   0x5   :  { %p185_p0 = scmp.ne.s32.totalorder %s333_s0, %s184_s18  ;;  %p188_p1 = scmp.lt.u32.totalorder %s184_s18, %s333_s0 }
   0x7   :  { %p190_p2 = pnand %p188_p1, %p185_p0 }
   0x9   :  { %193 = shalt.err (!%p190_p2)
}
   0xa   :  { %s194_s23 = scalar_lea.vmem %s18_s13, 128  ;;  %p199_p4 = scmp.lt.s32.totalorder %s18_s13, %s18_s13 }
   0xb   :  { %p195_p3 = scmp.ne.s32.totalorder %s18_s13, %s194_s23  ;;  %p200_p5 = scmp.lt.s32.totalorder %s194_s23, %s194_s23 }
   0xd   :  { %p201_p6 = por %p200_p5, %p199_p4 }
   0xf   :  { %p202_p7 = pnand %p201_p6, %p195_p3 }
  0x11   :  { %205 = shalt.err (!%p202_p7)
}
  0x12   :  { %20 = dma.hbm_to_vmem [thread:$0]  %s333_s0, 128, %s18_s13, [#allocation3]  }
  0x13   :  { %s206_s28 = scalar_lea.hbm %s334_s1, 256 }
  0x14   :  { %p207_p8 = scmp.ne.s32.totalorder %s334_s1, %s206_s28  ;;  %p210_p9 = scmp.lt.u32.totalorder %s206_s28, %s334_s1 }
  0x16   :  { %p212_p10 = pnand %p210_p9, %p207_p8 }
  0x18   :  { %215 = shalt.err (!%p212_p10)
}
  0x19   :  { %s216_s6 = scalar_lea.vmem %s284_s15, 256  ;;  %p221_p12 = scmp.lt.s32.totalorder %s284_s15, %s284_s15 }
  0x1a   :  { %p217_p11 = scmp.ne.s32.totalorder %s284_s15, %s216_s6  ;;  %p222_p13 = scmp.lt.s32.totalorder %s216_s6, %s216_s6 }
  0x1c   :  { %p223_p0 = por %p222_p13, %p221_p12 }
  0x1e   :  { %p224_p1 = pnand %p223_p0, %p217_p11 }
  0x20   :  { %227 = shalt.err (!%p224_p1)
}
  0x21   :  { %s258_s0 = smov 128   ;;  %s259_s7 = smov 8  }
  0x22   :  { %32 = dma.hbm_to_vmem [thread:$0]  %s334_s1, 256, %s284_s15, [#allocation6], %s258_s0, %s258_s0, %s259_s7  }
  0x23   :  { %250 = dma.done.wait [#allocation3], 128  }
  0x24   :  { %251 = vsyncadd [#allocation3], 4294967168 }
  0x25   :  { %252 = dma.done.wait [#allocation6], 256  }
  0x26   :  { %253 = vsyncadd [#allocation6], 4294967040  ;;  %v260_v0 = vmov 0.0|0.0   ;;  %vm261_vm0 = vmmov 0   ;;  %v262_v1 = vmov 0.0   ;;  %v42_v2 = vld [vmem:[#allocation5] sm:$0xff] }
  0x27   :  { %169 = vmatprep.subr.bf16.mxu0 %v260_v0  ;;  %166 = vmatprep.mubr.msk.f32.mxu0 %vm261_vm0, %v262_v1  ;;  %v43_v3 = vld [vmem:[#allocation5 + $0x8] sm:$0xff]  ;;  %v41_v5 = vld [vmem:[#allocation2] sm:$0xff]  ;;  %vm51_vm1 = vcmask 130048   ;;  %vm125_vm2 = vcmask 80896   ;;  %s263_s1 = smov [#allocation7]  }
  0x28   :  { %v170_v4 = vpack.c.bf16 %v43_v3, %v42_v2  ;;  %v157_v6 = vld [vmem:[%s335_s2] ss:$0 sm:$0xff]  ;;  %s147_s2 = sshll.u32 %s263_s1, 4  ;;  %s148_s2 = int_to_ptr.vmem [resolvable:$true] %s147_s2 }
  0x29   :  { %s228_s12 = scalar_lea.vmem %s148_s2, 128  ;;  %p233_p3 = scmp.lt.s32.totalorder %s148_s2, %s148_s2 }
  0x2a   :  { %171 = vmatpush3.bf16.msra.mxu0 %v170_v4  ;;  %p229_p2 = scmp.ne.s32.totalorder %s148_s2, %s228_s12  ;;  %p234_p4 = scmp.lt.s32.totalorder %s228_s12, %s228_s12 }
  0x2c   :  { %p235_p5 = por %p234_p4, %p233_p3 }
  0x2d   :  { %167 = vmatmul.mubr.msk.f32.vlgmr.msra.gmra.mrb[0].mxu0 %vm51_vm1, %v41_v5 }
  0x2e   :  { %p236_p6 = pnand %p235_p5, %p229_p2 }
 0x100   :  { %v121_v7 = vpop.f32.mrb[0].mxu0 }
 0x101   :  { %v122_v8 = vadd.f32 %v157_v6, %v121_v7  ;;  %v168_v9 = vpop.f32.mrb[1].mxu0 }
 0x103   :  { %v126_v10 = vsel %vm125_vm2, %v122_v8, -inf }
 0x104   :  { %127 = vmax.xlane.f32.xlu0 %v126_v10 }
 0x191   :  { %v128_v11 = vpop.xlane.xlu0 %127 }
 0x192   :  { %v129_v12 = vsub.f32 %v122_v8, %v128_v11 }
 0x194   :  { %v130_v13 = vmul.f32 1.442695, %v129_v12 }
 0x196   :  { %180 = vpow2.f32 %v130_v13 }
 0x1a0   :  { %v181_v14 = vpop.eup %180 }
 0x1a1   :  { %v132_v15 = vsel %vm125_vm2, %v181_v14, 0.0 }
 0x1a2   :  { %133 = vadd.xlane.f32.xlu0 %v132_v15 }
 0x22f   :  { %v134_v16 = vpop.xlane.xlu0 %133 }
 0x230   :  { %182 = vrcp.f32 %v134_v16 }
 0x23a   :  { %v183_v17 = vpop.eup %182 }
 0x23b   :  { %v136_v18 = vmul.f32 %v183_v17, %v134_v16 }
 0x23d   :  { %v137_v19 = vsub.f32 2.0, %v136_v18 }
 0x23f   :  { %v138_v20 = vmul.f32 %v183_v17, %v137_v19 }
 0x241   :  { %v139_v21 = vmul.f32 %v181_v14, %v138_v20 }
 0x243   :  { %140 = vst.msk [vmem:[#allocation7] sm:$0xff] %vm125_vm2, %v139_v21 }
 0x244   :  { %239 = shalt.err (!%p236_p6)
}
 0x245   :  { %s240_s15 = scalar_lea.hbm %s336_s3, 128 }
 0x246   :  { %p241_p7 = scmp.ne.s32.totalorder %s336_s3, %s240_s15  ;;  %p244_p8 = scmp.lt.u32.totalorder %s240_s15, %s336_s3 }
 0x248   :  { %p246_p9 = pnand %p244_p8, %p241_p7 }
 0x24a   :  { %249 = shalt.err (!%p246_p9)
}
 0x24b   :  { %150 = dma.vmem_to_hbm [thread:$0]  %s148_s2, 128, %s336_s3, [#allocation4]  }
 0x24c   :  { %254 = dma.done.wait [#allocation4], 128  }
 0x24d   :  { %255 = vsyncadd [#allocation4], 4294967168 }
 0x24e   :  { %154 = vsyncpa [#allocation3], 1 }
 0x24f   :  { %155 = vsyncpa [#allocation6], 1 }
 0x250   :  { %156 = vsyncpa [#allocation4], 1 }

</bundles_post_ra>
